<compile_context>
chip_gen: v7x
topology: tpu7x:2x2x1
jax: 0.10.0
libtpu: 0.0.40
codegen_flags: <defaults>
</compile_context>

<pallas_src>
import functools
from typing import NamedTuple

import jax
import jax.numpy as jnp
from jax import lax
from jax.experimental import pallas as pl
from jax.experimental.pallas import tpu as pltpu


_FEATURE_MAJOR_MIN_BATCH = 128

# Whole-array SMEM operand (used for the dt scalar).
_SMEM_SPEC = pl.BlockSpec(memory_space=pltpu.MemorySpace.SMEM)


# ----------------------------------------------------------------------------
# Parameter packing (all per-call prep done once, outside the kernels).
# ----------------------------------------------------------------------------
class PackedParams(NamedTuple):
    # batch-major set: forward is y(B,2) @ w1(2,H) ...
    w1: jax.Array    # (2, H)
    b1: jax.Array    # (1, H)
    w2: jax.Array    # (H, H)
    b2: jax.Array    # (1, H)
    w3t: jax.Array   # (2, H)   (w3 transposed: rows are output features)
    b3: jax.Array    # (1, 2)
    # feature-major set: forward is w1t(H,2) @ y(2,B) ...
    w1t: jax.Array   # (H, 2)
    b1c: jax.Array   # (H, 1)
    w2t: jax.Array   # (H, H)
    b2c: jax.Array   # (H, 1)
    b3c: jax.Array   # (2, 1)


def pack_params(w1, b1, w2, b2, w3, b3):
    """Prepack weights/biases for both kernel layouts (call once, reuse)."""
    f32 = lambda a: jnp.asarray(a, jnp.float32)
    w1, w2, w3 = f32(w1), f32(w2), f32(w3)
    b1, b2, b3 = f32(b1).reshape(-1), f32(b2).reshape(-1), f32(b3).reshape(-1)
    hidden = w1.shape[1]
    return PackedParams(
        w1=w1, b1=b1.reshape(1, hidden), w2=w2, b2=b2.reshape(1, hidden),
        w3t=w3.T, b3=b3.reshape(1, 2),
        w1t=w1.T, b1c=b1.reshape(hidden, 1), w2t=w2.T, b2c=b2.reshape(hidden, 1),
        b3c=b3.reshape(2, 1),
    )


# ----------------------------------------------------------------------------
# Batch-major ((batch, features)) kernels — small-batch / latency path.
# ----------------------------------------------------------------------------
def _mlp_bm(y0, y1, w1r0, w1r1, b1, w2, b2, w3r0, w3r1, b30, b31, *, bf16_matmul):
    """MLP on (bt, 1) state columns; K=2 / N=2 layers stay on the VPU/XLU."""
    # Layer 1: (bt,2)x(2,H) -> VPU broadcast multiply-add.
    h1 = jnp.tanh(y0 * w1r0 + y1 * w1r1 + b1)
    # Layer 2: (bt,H)x(H,H) -> MXU (only matmul worth the MXU here).
    lhs = h1.astype(jnp.bfloat16) if bf16_matmul else h1
    h2 = jnp.tanh(jnp.dot(lhs, w2, preferred_element_type=jnp.float32) + b2)
    # Layer 3: (bt,H)x(H,2) -> two lane reductions; b3 folded per-column.
    d0 = jnp.sum(h2 * w3r0, axis=-1, keepdims=True) + b30
    d1 = jnp.sum(h2 * w3r1, axis=-1, keepdims=True) + b31
    return d0, d1


def _load_bm_weights(w1_ref, b1_ref, w2_ref, b2_ref, w3t_ref, b3_ref, bf16_matmul):
    """Load weights and hoist every static slice out of any loop body."""
    w1 = w1_ref[...]
    w2 = w2_ref[...]
    if bf16_matmul:
        w2 = w2.astype(jnp.bfloat16)
    w3t = w3t_ref[...]
    b3 = b3_ref[...]
    return (w1[0:1, :], w1[1:2, :], b1_ref[...], w2, b2_ref[...],
            w3t[0:1, :], w3t[1:2, :], b3[0:1, 0:1], b3[0:1, 1:2])


def _fwd_bm_kernel(y_ref, w1_ref, b1_ref, w2_ref, b2_ref, w3t_ref, b3_ref, o_ref,
                   *, bf16_matmul):
    wargs = _load_bm_weights(w1_ref, b1_ref, w2_ref, b2_ref, w3t_ref, b3_ref,
                             bf16_matmul)
    y = y_ref[...].astype(jnp.float32)
    d0, d1 = _mlp_bm(y[:, 0:1], y[:, 1:2], *wargs, bf16_matmul=bf16_matmul)
    o_ref[...] = jnp.concatenate([d0, d1], axis=-1).astype(o_ref.dtype)


def _euler_bm_kernel(dt_ref, y_ref, w1_ref, b1_ref, w2_ref, b2_ref, w3t_ref, b3_ref,
                     o_ref, *, n_steps, unroll, bf16_matmul):
    dt = dt_ref[0, 0]
    wargs = _load_bm_weights(w1_ref, b1_ref, w2_ref, b2_ref, w3t_ref, b3_ref,
                             bf16_matmul)
    y = y_ref[...].astype(jnp.float32)
    y0, y1 = y[:, 0:1], y[:, 1:2]   # carry the two columns; no per-step concat

    def body(_, carry):
        c0, c1 = carry
        d0, d1 = _mlp_bm(c0, c1, *wargs, bf16_matmul=bf16_matmul)
        return (c0 + dt * d0, c1 + dt * d1)

    y0, y1 = lax.fori_loop(0, n_steps, body, (y0, y1), unroll=unroll)
    o_ref[...] = jnp.concatenate([y0, y1], axis=-1).astype(o_ref.dtype)


# ----------------------------------------------------------------------------
# Feature-major ((features, batch)) kernels — large-batch / lane-dense path.
# ----------------------------------------------------------------------------
def _mlp_fm(y, w1c0, w1c1, b1c, w2t, b2c, w3t, b3c, *, bf16_matmul):
    """MLP on (2, bt) state with batch on the 128-lane axis; output lane-dense."""
    # Layer 1: 2-sublane broadcast-FMA -> (H, bt).
    h1 = jnp.tanh(w1c0 * y[0:1, :] + w1c1 * y[1:2, :] + b1c)
    # Layer 2: (H,H)x(H,bt) -> MXU.
    rhs = h1.astype(jnp.bfloat16) if bf16_matmul else h1
    h2 = jnp.tanh(jnp.dot(w2t, rhs, preferred_element_type=jnp.float32) + b2c)
    # Layer 3: tiny contraction (2,H)x(H,bt) -> (2, bt).
    return jnp.dot(w3t, h2, preferred_element_type=jnp.float32) + b3c


def _load_fm_weights(w1t_ref, b1c_ref, w2t_ref, b2c_ref, w3t_ref, b3c_ref, bf16_matmul):
    w1t = w1t_ref[...]
    w2t = w2t_ref[...]
    if bf16_matmul:
        w2t = w2t.astype(jnp.bfloat16)
    return (w1t[:, 0:1], w1t[:, 1:2], b1c_ref[...], w2t, b2c_ref[...],
            w3t_ref[...], b3c_ref[...])


def _fwd_fm_kernel(y_ref, w1t_ref, b1c_ref, w2t_ref, b2c_ref, w3t_ref, b3c_ref, o_ref,
                   *, bf16_matmul):
    wargs = _load_fm_weights(w1t_ref, b1c_ref, w2t_ref, b2c_ref, w3t_ref, b3c_ref,
                             bf16_matmul)
    y = y_ref[...].astype(jnp.float32)
    o_ref[...] = _mlp_fm(y, *wargs, bf16_matmul=bf16_matmul).astype(o_ref.dtype)


def _euler_fm_kernel(dt_ref, y_ref, w1t_ref, b1c_ref, w2t_ref, b2c_ref, w3t_ref,
                     b3c_ref, o_ref, *, n_steps, unroll, bf16_matmul):
    dt = dt_ref[0, 0]
    wargs = _load_fm_weights(w1t_ref, b1c_ref, w2t_ref, b2c_ref, w3t_ref, b3c_ref,
                             bf16_matmul)
    y0 = y_ref[...].astype(jnp.float32)

    def body(_, y):
        return y + dt * _mlp_fm(y, *wargs, bf16_matmul=bf16_matmul)

    y_final = lax.fori_loop(0, n_steps, body, y0, unroll=unroll)
    o_ref[...] = y_final.astype(o_ref.dtype)


# ----------------------------------------------------------------------------
# Tiling helpers and pallas_call launchers.
# ----------------------------------------------------------------------------
def _pick_batch_tile(batch):
    """Batch-major sublane tile: multiple of 8, <= 1024, >= 2 tiles when batch >= 16."""
    if batch < 16 or batch % 8 != 0:
        return batch                       # single full-batch tile (a few KB of VMEM)
    cap = min(1024, batch // 2)            # >= 2 tiles so v7x's second TC gets work
    for bt in range(cap - cap % 8, 0, -8):
        if batch % bt == 0:
            return bt
    return batch


def _pick_lane_tile(batch):
    """Feature-major lane tile: multiple of 128, >= 2 tiles when batch >= 256."""
    if batch % 128 != 0:
        return batch
    cap = min(2048, batch if batch < 256 else batch // 2)
    for bt in range(cap - cap % 128, 0, -128):
        if batch % bt == 0:
            return bt
    return batch


def _const_spec(arr):
    # Constant block index across the grid -> DMA'd once, stays VMEM-resident.
    return pl.BlockSpec(arr.shape, lambda i: (0, 0))


def _launch_bm(kernel, y, pp, extra_inputs=()):
    batch = y.shape[0]
    bt = _pick_batch_tile(batch)
    weights = (pp.w1, pp.b1, pp.w2, pp.b2, pp.w3t, pp.b3)
    in_specs = ([_SMEM_SPEC] * len(extra_inputs)
                + [pl.BlockSpec((bt, 2), lambda i: (i, 0))]
                + [_const_spec(a) for a in weights])
    return pl.pallas_call(
        kernel,
        out_shape=jax.ShapeDtypeStruct((batch, 2), y.dtype),
        grid=(batch // bt,),
        in_specs=in_specs,
        out_specs=pl.BlockSpec((bt, 2), lambda i: (i, 0)),
        compiler_params=pltpu.CompilerParams(dimension_semantics=("parallel",)),
    )(*extra_inputs, y, *weights)


def _launch_fm(kernel, y, pp, extra_inputs=()):
    batch = y.shape[0]
    bt = _pick_lane_tile(batch)
    y_fm = y.T                              # (2, batch): batch on the lane axis
    weights = (pp.w1t, pp.b1c, pp.w2t, pp.b2c, pp.w3t, pp.b3c)
    in_specs = ([_SMEM_SPEC] * len(extra_inputs)
                + [pl.BlockSpec((2, bt), lambda i: (0, i))]
                + [_const_spec(a) for a in weights])
    out_fm = pl.pallas_call(
        kernel,
        out_shape=jax.ShapeDtypeStruct((2, batch), y.dtype),
        grid=(batch // bt,),
        in_specs=in_specs,
        out_specs=pl.BlockSpec((2, bt), lambda i: (0, i)),
        compiler_params=pltpu.CompilerParams(dimension_semantics=("parallel",)),
    )(*extra_inputs, y_fm, *weights)
    return out_fm.T


# ----------------------------------------------------------------------------
# Public API.
# ----------------------------------------------------------------------------
def odefunc_forward(t, y, params, *, use_bf16_matmul=False):
    """Single evaluation dy/dt = net(y) (torch ODEFunc.forward). `t` unused.

    Compatibility shim: for rollouts prefer odefunc_integrate, which fuses the
    whole integration into one pallas_call.
    """
    del t
    pp = params if isinstance(params, PackedParams) else pack_params(*params)
    if y.shape[0] >= _FEATURE_MAJOR_MIN_BATCH:
        kernel = functools.partial(_fwd_fm_kernel, bf16_matmul=use_bf16_matmul)
        return _launch_fm(kernel, y, pp)
    kernel = functools.partial(_fwd_bm_kernel, bf16_matmul=use_bf16_matmul)
    return _launch_bm(kernel, y, pp)


def odefunc_integrate(y0, params, *, dt, n_steps, unroll=2, use_bf16_matmul=False):
    """Fused explicit-Euler rollout: n_steps of y += dt * net(y) in ONE pallas_call.

    Weights stay resident in VMEM/vregs across the whole rollout; dt lives in SMEM so
    changing dt does not recompile (only n_steps / unroll are compile-time constants).
    """
    pp = params if isinstance(params, PackedParams) else pack_params(*params)
    dt_arr = jnp.asarray(dt, jnp.float32).reshape(1, 1)
    if y0.shape[0] >= _FEATURE_MAJOR_MIN_BATCH:
        kernel = functools.partial(_euler_fm_kernel, n_steps=int(n_steps),
                                   unroll=int(unroll), bf16_matmul=use_bf16_matmul)
        return _launch_fm(kernel, y0, pp, extra_inputs=(dt_arr,))
    kernel = functools.partial(_euler_bm_kernel, n_steps=int(n_steps),
                               unroll=int(unroll), bf16_matmul=use_bf16_matmul)
    return _launch_bm(kernel, y0, pp, extra_inputs=(dt_arr,))


def init_params(hidden_dim, key):
    """Deterministic init mimicking torch.nn.Linear default (uniform +/- 1/sqrt(fan_in))."""
    ks = jax.random.split(key, 6)

    def linear(kw, kb, fan_in, fan_out):
        bound = 1.0 / jnp.sqrt(jnp.float32(fan_in))
        w = jax.random.uniform(kw, (fan_in, fan_out), jnp.float32, -bound, bound)
        b = jax.random.uniform(kb, (fan_out,), jnp.float32, -bound, bound)
        return w, b

    w1, b1 = linear(ks[0], ks[1], 2, hidden_dim)
    w2, b2 = linear(ks[2], ks[3], hidden_dim, hidden_dim)
    w3, b3 = linear(ks[4], ks[5], hidden_dim, 2)
    return (w1, b1, w2, b2, w3, b3)


if __name__ == "__main__":
    hidden_dim = 32

    key = jax.random.PRNGKey(0)
    k_params, k_y, k_yl = jax.random.split(key, 3)
    raw_params = init_params(hidden_dim, k_params)
    packed = pack_params(*raw_params)        # per-call prep done once
    w1, b1, w2, b2, w3, b3 = raw_params
    t = jnp.zeros((), jnp.float32)           # unused (autonomous system)

    def ref_f(yy):
        h = jnp.tanh(yy @ w1 + b1)
        h = jnp.tanh(h @ w2 + b2)
        return h @ w3 + b3

    # --- small batch: single forward pass (module semantics, batch-major path) ---
    batch = 8
    y = jax.random.normal(k_y, (batch, 2), jnp.float32)   # (position, velocity)
    out = jax.block_until_ready(odefunc_forward(t, y, packed))
    assert out.shape == (batch, 2)
    assert jnp.allclose(out, ref_f(y), atol=1e-4, rtol=1e-4)

    # --- small batch: fused Euler rollout (launch/DMA overhead amortized) ---
    dt, n_steps = 0.01, 100
    y_final = jax.block_until_ready(
        odefunc_integrate(y, packed, dt=dt, n_steps=n_steps, unroll=2))
    y_ref = y
    for _ in range(n_steps):
        y_ref = y_ref + dt * ref_f(y_ref)
    assert y_final.shape == (batch, 2)
    assert jnp.allclose(y_final, y_ref, atol=1e-3, rtol=1e-3)

    # --- large batch: lane-dense feature-major path ---
    batch_l = 256
    yl = jax.random.normal(k_yl, (batch_l, 2), jnp.float32)
    out_l = jax.block_until_ready(odefunc_forward(t, yl, packed))
    assert out_l.shape == (batch_l, 2)
    assert jnp.allclose(out_l, ref_f(yl), atol=1e-3, rtol=1e-3)

    yl_final = jax.block_until_ready(
        odefunc_integrate(yl, packed, dt=dt, n_steps=10, unroll=2))
    yl_ref = yl
    for _ in range(10):
        yl_ref = yl_ref + dt * ref_f(yl_ref)
    assert jnp.allclose(yl_final, yl_ref, atol=1e-3, rtol=1e-3)

    # --- optional bf16 MXU operands for the HxH matmul (large-batch throughput) ---
    def ref_f_bf16(yy):
        h = jnp.tanh(yy @ w1 + b1)
        h = jnp.tanh(jnp.dot(h.astype(jnp.bfloat16), w2.astype(jnp.bfloat16),
                             preferred_element_type=jnp.float32) + b2)
        return h @ w3 + b3

    out_l_bf16 = jax.block_until_ready(
        odefunc_forward(t, yl, packed, use_bf16_matmul=True))
    assert jnp.allclose(out_l_bf16, ref_f_bf16(yl), atol=1e-2, rtol=1e-2)

    print("KERNEL_OK")
</pallas_src>

<mosaic_0001>
module attributes {stable_mosaic.version = 11 : i64} {
  func.func @_fwd_bm_kernel(%arg0: i32, %arg1: memref<8x2xf32, #tpu.memory_space<vmem>>, %arg2: memref<2x32xf32, #tpu.memory_space<vmem>>, %arg3: memref<1x32xf32, #tpu.memory_space<vmem>>, %arg4: memref<32x32xf32, #tpu.memory_space<vmem>>, %arg5: memref<1x32xf32, #tpu.memory_space<vmem>>, %arg6: memref<2x32xf32, #tpu.memory_space<vmem>>, %arg7: memref<1x2xf32, #tpu.memory_space<vmem>>, %arg8: memref<8x2xf32, #tpu.memory_space<vmem>>) attributes {dimension_semantics = [#tpu.dimension_semantics<parallel>], iteration_bounds = array<i64: 1>, scalar_prefetch = 0 : i64, scratch_operands = 0 : i64, tpu.core_type = #tpu.core_type<tc>, window_params = [{transform_indices = @transform_0, window_bounds = array<i64: 8, 2>}, {pipeline_mode = #tpu.pipeline_mode<synchronous>, transform_indices = @transform_1, window_bounds = array<i64: 2, 32>}, {pipeline_mode = #tpu.pipeline_mode<synchronous>, transform_indices = @transform_2, window_bounds = array<i64: 1, 32>}, {pipeline_mode = #tpu.pipeline_mode<synchronous>, transform_indices = @transform_3, window_bounds = array<i64: 32, 32>}, {pipeline_mode = #tpu.pipeline_mode<synchronous>, transform_indices = @transform_4, window_bounds = array<i64: 1, 32>}, {pipeline_mode = #tpu.pipeline_mode<synchronous>, transform_indices = @transform_5, window_bounds = array<i64: 2, 32>}, {pipeline_mode = #tpu.pipeline_mode<synchronous>, transform_indices = @transform_6, window_bounds = array<i64: 1, 2>}, {transform_indices = @transform_7, window_bounds = array<i64: 8, 2>}]} {
    %c0 = arith.constant 0 : index
    %c0_0 = arith.constant 0 : index
    %0 = vector.load %arg2[%c0, %c0_0] : memref<2x32xf32, #tpu.memory_space<vmem>>, vector<2x32xf32>
    %c0_1 = arith.constant 0 : index
    %c0_2 = arith.constant 0 : index
    %1 = vector.load %arg4[%c0_1, %c0_2] : memref<32x32xf32, #tpu.memory_space<vmem>>, vector<32x32xf32>
    %c0_3 = arith.constant 0 : index
    %c0_4 = arith.constant 0 : index
    %2 = vector.load %arg6[%c0_3, %c0_4] : memref<2x32xf32, #tpu.memory_space<vmem>>, vector<2x32xf32>
    %c0_5 = arith.constant 0 : index
    %c0_6 = arith.constant 0 : index
    %3 = vector.load %arg7[%c0_5, %c0_6] : memref<1x2xf32, #tpu.memory_space<vmem>>, vector<1x2xf32>
    %4 = vector.extract_strided_slice %0 {offsets = [0, 0], sizes = [1, 32], strides = [1, 1]} : vector<2x32xf32> to vector<1x32xf32>
    %5 = vector.extract_strided_slice %0 {offsets = [1, 0], sizes = [1, 32], strides = [1, 1]} : vector<2x32xf32> to vector<1x32xf32>
    %c0_7 = arith.constant 0 : index
    %c0_8 = arith.constant 0 : index
    %6 = vector.load %arg3[%c0_7, %c0_8] : memref<1x32xf32, #tpu.memory_space<vmem>>, vector<1x32xf32>
    %c0_9 = arith.constant 0 : index
    %c0_10 = arith.constant 0 : index
    %7 = vector.load %arg5[%c0_9, %c0_10] : memref<1x32xf32, #tpu.memory_space<vmem>>, vector<1x32xf32>
    %8 = vector.extract_strided_slice %2 {offsets = [0, 0], sizes = [1, 32], strides = [1, 1]} : vector<2x32xf32> to vector<1x32xf32>
    %9 = vector.extract_strided_slice %2 {offsets = [1, 0], sizes = [1, 32], strides = [1, 1]} : vector<2x32xf32> to vector<1x32xf32>
    %10 = vector.extract_strided_slice %3 {offsets = [0, 0], sizes = [1, 1], strides = [1, 1]} : vector<1x2xf32> to vector<1x1xf32>
    %11 = vector.extract_strided_slice %3 {offsets = [0, 1], sizes = [1, 1], strides = [1, 1]} : vector<1x2xf32> to vector<1x1xf32>
    %c0_11 = arith.constant 0 : index
    %c0_12 = arith.constant 0 : index
    %12 = vector.load %arg1[%c0_11, %c0_12] : memref<8x2xf32, #tpu.memory_space<vmem>>, vector<8x2xf32>
    %13 = vector.extract_strided_slice %12 {offsets = [0, 0], sizes = [8, 1], strides = [1, 1]} : vector<8x2xf32> to vector<8x1xf32>
    %14 = vector.extract_strided_slice %12 {offsets = [0, 1], sizes = [8, 1], strides = [1, 1]} : vector<8x2xf32> to vector<8x1xf32>
    %15 = vector.broadcast %13 : vector<8x1xf32> to vector<8x32xf32>
    %16 = vector.broadcast %4 : vector<1x32xf32> to vector<8x32xf32>
    %17 = arith.mulf %15, %16 : vector<8x32xf32>
    %18 = vector.broadcast %14 : vector<8x1xf32> to vector<8x32xf32>
    %19 = vector.broadcast %5 : vector<1x32xf32> to vector<8x32xf32>
    %20 = arith.mulf %18, %19 : vector<8x32xf32>
    %21 = arith.addf %17, %20 : vector<8x32xf32>
    %22 = vector.broadcast %6 : vector<1x32xf32> to vector<8x32xf32>
    %23 = arith.addf %21, %22 : vector<8x32xf32>
    %24 = math.tanh %23 : vector<8x32xf32>
    %cst = arith.constant dense<0.000000e+00> : vector<8x32xf32>
    %25 = tpu.matmul %24, %1, %cst {dimension_numbers = #tpu.dot_dimension_numbers<[1], [0], [0], [1], [0, 0, 1, 1], [], []>} : vector<8x32xf32>, vector<32x32xf32>, vector<8x32xf32> -> vector<8x32xf32>
    %26 = vector.broadcast %7 : vector<1x32xf32> to vector<8x32xf32>
    %27 = arith.addf %25, %26 : vector<8x32xf32>
    %28 = math.tanh %27 : vector<8x32xf32>
    %29 = vector.broadcast %8 : vector<1x32xf32> to vector<8x32xf32>
    %30 = arith.mulf %28, %29 : vector<8x32xf32>
    %cst_13 = arith.constant dense<0.000000e+00> : vector<8xf32>
    %31 = vector.multi_reduction <add>, %30, %cst_13 [1] : vector<8x32xf32> to vector<8xf32>
    %32 = vector.shape_cast %31 : vector<8xf32> to vector<8x1xf32>
    %33 = vector.broadcast %10 : vector<1x1xf32> to vector<8x1xf32>
    %34 = arith.addf %32, %33 : vector<8x1xf32>
    %35 = vector.broadcast %9 : vector<1x32xf32> to vector<8x32xf32>
    %36 = arith.mulf %28, %35 : vector<8x32xf32>
    %cst_14 = arith.constant dense<0.000000e+00> : vector<8xf32>
    %37 = vector.multi_reduction <add>, %36, %cst_14 [1] : vector<8x32xf32> to vector<8xf32>
    %38 = vector.shape_cast %37 : vector<8xf32> to vector<8x1xf32>
    %39 = vector.broadcast %11 : vector<1x1xf32> to vector<8x1xf32>
    %40 = arith.addf %38, %39 : vector<8x1xf32>
    %41 = tpu.concatenate %34, %40 in 1 : vector<8x1xf32>, vector<8x1xf32> -> vector<8x2xf32>
    %c0_15 = arith.constant 0 : index
    %c0_16 = arith.constant 0 : index
    %42 = vector.load %arg8[%c0_15, %c0_16] : memref<8x2xf32, #tpu.memory_space<vmem>>, vector<8x2xf32>
    tpu.vector_store %arg8[%c0_15, %c0_16], %41 {strides = array<i32>} : memref<8x2xf32, #tpu.memory_space<vmem>>, vector<8x2xf32>,
    return
  }
  func.func @transform_0(%arg0: i32) -> (i32, i32) {
    %c0_i32 = arith.constant 0 : i32
    %c0_i32_0 = arith.constant 0 : i32
    return %arg0, %c0_i32 : i32, i32
  }
  func.func @transform_1(%arg0: i32) -> (i32, i32) {
    %c0_i32 = arith.constant 0 : i32
    %c0_i32_0 = arith.constant 0 : i32
    %c0_i32_1 = arith.constant 0 : i32
    return %c0_i32, %c0_i32_0 : i32, i32
  }
  func.func @transform_2(%arg0: i32) -> (i32, i32) {
    %c0_i32 = arith.constant 0 : i32
    %c0_i32_0 = arith.constant 0 : i32
    %c0_i32_1 = arith.constant 0 : i32
    return %c0_i32, %c0_i32_0 : i32, i32
  }
  func.func @transform_3(%arg0: i32) -> (i32, i32) {
    %c0_i32 = arith.constant 0 : i32
    %c0_i32_0 = arith.constant 0 : i32
    %c0_i32_1 = arith.constant 0 : i32
    return %c0_i32, %c0_i32_0 : i32, i32
  }
  func.func @transform_4(%arg0: i32) -> (i32, i32) {
    %c0_i32 = arith.constant 0 : i32
    %c0_i32_0 = arith.constant 0 : i32
    %c0_i32_1 = arith.constant 0 : i32
    return %c0_i32, %c0_i32_0 : i32, i32
  }
  func.func @transform_5(%arg0: i32) -> (i32, i32) {
    %c0_i32 = arith.constant 0 : i32
    %c0_i32_0 = arith.constant 0 : i32
    %c0_i32_1 = arith.constant 0 : i32
    return %c0_i32, %c0_i32_0 : i32, i32
  }
  func.func @transform_6(%arg0: i32) -> (i32, i32) {
    %c0_i32 = arith.constant 0 : i32
    %c0_i32_0 = arith.constant 0 : i32
    %c0_i32_1 = arith.constant 0 : i32
    return %c0_i32, %c0_i32_0 : i32, i32
  }
  func.func @transform_7(%arg0: i32) -> (i32, i32) {
    %c0_i32 = arith.constant 0 : i32
    %c0_i32_0 = arith.constant 0 : i32
    return %arg0, %c0_i32 : i32, i32
  }
}

</mosaic_0001>

<bundles_post_ra>
// kernel: tpu_custom_call.1
= control target key start
LH: loop header
LB: loop body
LE: loop exit
PB: predicated region body
PF: predicated region fallthrough
CT: control target
= control target key end

     0   :  { %12 = vsyncpa [#allocation3], 0  ;;  %s256_s24 = smov [#allocation2]   ;;  %s340_s0 = inlined_call_operand.vmem [shape: f32[8,2], index: 0, kind: input, shape index: {}]   ;;  %s341_s1 = inlined_call_operand.vmem [shape: f32[2,32], index: 1, kind: input, shape index: {}]   ;;  %s342_s2 = inlined_call_operand.vmem [shape: f32[1,32], index: 2, kind: input, shape index: {}]   ;;  %s343_s3 = inlined_call_operand.hbm [shape: f32[32,32], index: 3, kind: input, shape index: {}]   ;;  %s344_s4 = inlined_call_operand.vmem [shape: f32[1,32], index: 4, kind: input, shape index: {}]   ;;  %s345_s5 = inlined_call_operand.vmem [shape: f32[2,32], index: 5, kind: input, shape index: {}]   ;;  %s346_s6 = inlined_call_operand.vmem [shape: f32[1,2], index: 6, kind: input, shape index: {}]   ;;  %s347_s7 = inlined_call_operand.vmem [shape: f32[8,2], index: 7, kind: output, shape index: {}]  }
   0x1   :  { %s24_s25 = sshll.u32 %s256_s24, 4  ;;  %s232_s28 = scalar_lea.hbm %s343_s3, 512  ;;  %s25_s25 = int_to_ptr.vmem [resolvable:$true] %s24_s25 }
   0x2   :  { %p233_p0 = scmp.ne.s32.totalorder %s343_s3, %s232_s28  ;;  %p236_p1 = scmp.lt.u32.totalorder %s232_s28, %s343_s3 }
   0x4   :  { %p238_p2 = pnand %p236_p1, %p233_p0 }
   0x6   :  { %241 = shalt.err (!%p238_p2)
}
   0x7   :  { %s242_s10 = scalar_lea.vmem %s25_s25, 512  ;;  %p247_p4 = scmp.lt.s32.totalorder %s25_s25, %s25_s25 }
   0x8   :  { %p243_p3 = scmp.ne.s32.totalorder %s25_s25, %s242_s10  ;;  %p248_p5 = scmp.lt.s32.totalorder %s242_s10, %s242_s10 }
   0xa   :  { %p249_p6 = por %p248_p5, %p247_p4 }
   0xc   :  { %p250_p7 = pnand %p249_p6, %p243_p3 }
   0xe   :  { %253 = shalt.err (!%p250_p7)
}
   0xf   :  { %s257_s11 = smov 128   ;;  %s258_s12 = smov 8  }
  0x10   :  { %30 = dma.hbm_to_vmem [thread:$0]  %s343_s3, 512, %s25_s25, [#allocation3], %s257_s11, %s257_s11, %s258_s12  }
  0x11   :  { %254 = dma.done.wait [#allocation3], 512  }
  0x12   :  { %255 = vsyncadd [#allocation3], 4294966784  ;;  %v259_v0 = vmov 0   ;;  %v49_v1 = vld [vmem:[%s340_s0] sm:$0xff]  ;;  %v260_v2 = vmov 1   ;;  %v42_v4 = vld [vmem:[#allocation2 + $0x8] sm:$0xff]  ;;  %v55_v11 = vlaneseq }
  0x13   :  { %226 = vset.pattern.permute.xlu0 %v259_v0  ;;  %v41_v3 = vld [vmem:[#allocation2] sm:$0xff]  ;;  %v43_v5 = vld [vmem:[#allocation2 + $0x10] sm:$0xff]  ;;  %v261_v6 = vmov 0.0|0.0   ;;  %v44_v8 = vld [vmem:[#allocation2 + $0x18] sm:$0xff]  ;;  %vm262_vm0 = vmmov 0   ;;  %v263_v9 = vmov 0.0  }
  0x14   :  { %52 = vperm.xlu0 %226, %v49_v1   ;;  %212 = vmatprep.subr.bf16.mxu0 %v261_v6  ;;  %v213_v7 = vpack.c.bf16 %v42_v4, %v41_v3  ;;  %v216_v10 = vpack.c.bf16 %v44_v8, %v43_v5  ;;  %v56_v12 = vshrl.u32 %v55_v11, 7  ;;  %v40_v15 = vld [vmem:[%s341_s1] sm:$0x3]  ;;  %vm84_vm1 = vcmask 261120  }
  0x15   :  { %209 = vmatprep.mubr.msk.f32.mxu0 %vm262_vm0, %v263_v9  ;;  %v192_v22 = vld [vmem:[%s342_s2] ss:$0 sm:$0xff]  ;;  %vm183_vm2 = vcmask 7168   ;;  %vm185_vm3 = vcmask 15360  }
  0x16   :  { %214 = vmatpush3.bf16.msra.mxu0 %v213_v7  ;;  %v57_v13 = vsub.s32 0, %v56_v12  ;;  %v66_v14 = vsub.s32 1, %v56_v12  ;;  %v193_v26 = vld [vmem:[%s344_s4] ss:$0 sm:$0xff] }
  0x17   :  { %215 = vmatprep.subr.bf16.mxu0 %v261_v6  ;;  %v45_v30 = vld [vmem:[%s345_s5] sm:$0x3] }
  0x18   :  { %227 = vset.pattern.permute.xlu0 %v260_v2  ;;  %v58_v17 = vrot.slane %v40_v15, %v57_v13  ;;  %v67_v18 = vrot.slane %v40_v15, %v66_v14  ;;  %v162_v31 = vrot.slane %v45_v30, %v57_v13  ;;  %v177_v32 = vrot.slane %v45_v30, %v66_v14  ;;  %v195_v39 = vld [vmem:[%s346_s6] ss:$0 sm:$0xff] }
  0x19   :  { %61 = vperm.xlu0 %227, %v49_v1  }
  0x1a   :  { %217 = vmatpush3.bf16.msra.mxu0 %v216_v10 }
  0x93   :  { %v53_v16 = vpop.permute.xlu0 %52 }
  0x94   :  { %v59_v20 = vmul.f32 %v58_v17, %v53_v16 }
  0x98   :  { %v62_v19 = vpop.permute.xlu0 %61 }
  0x99   :  { %v68_v21 = vmul.f32 %v67_v18, %v62_v19 }
  0x9b   :  { %v69_v23 = vadd.f32 %v68_v21, %v59_v20 }
  0x9d   :  { %v76_v24 = vadd.f32 %v192_v22, %v69_v23 }
  0x9f   :  { %228 = vtanh.f32 %v76_v24 }
  0xa9   :  { %v229_v25 = vpop.eup %228 }
  0xaa   :  { %210 = vmatmul.mubr.msk.f32.vlgmr.msra.gmra.mrb[0].mxu0 %vm84_vm1, %v229_v25 }
 0x17d   :  { %v154_v27 = vpop.f32.mrb[0].mxu0 }
 0x17e   :  { %v155_v28 = vadd.f32 %v193_v26, %v154_v27  ;;  %v211_v29 = vpop.f32.mrb[1].mxu0 }
 0x180   :  { %230 = vtanh.f32 %v155_v28 }
 0x18a   :  { %v231_v33 = vpop.eup %230 }
 0x18b   :  { %v163_v34 = vmul.f32 %v231_v33, %v162_v31  ;;  %v178_v36 = vmul.f32 %v231_v33, %v177_v32 }
 0x18d   :  { %v164_v35 = vsel %vm84_vm1, %v163_v34, 0.0  ;;  %v179_v37 = vsel %vm84_vm1, %v178_v36, 0.0 }
 0x18e   :  { %165 = vadd.xlane.f32.xlu1 %v164_v35 }
 0x192   :  { %180 = vadd.xlane.f32.xlu1 %v179_v37 }
 0x21b   :  { %v166_v38 = vpop.xlane.xlu1 %165 }
 0x21c   :  { %v173_v41 = vadd.f32 %v195_v39, %v166_v38 }
 0x21f   :  { %v181_v40 = vpop.xlane.xlu1 %180 }
 0x220   :  { %v182_v42 = vadd.f32 %v195_v39, %v181_v40 }
 0x222   :  { %v184_v43 = vsel %vm183_vm2, %v173_v41, %v182_v42 }
 0x223   :  { %186 = vst.msk [vmem:[%s347_s7] sm:$0xff] %vm185_vm3, %v184_v43 }
 0x224   :  { %191 = vsyncpa [#allocation3], 1 }

</bundles_post_ra>
